<compile_context>
chip_gen: v6e
topology: v6e:2x2x1
jax: 0.10.0
libtpu: 0.0.40
codegen_flags: <defaults>
</compile_context>

<pallas_src>
import functools

import jax
import jax.numpy as jnp
from jax.experimental import pallas as pl
from jax.experimental.pallas import tpu as pltpu

NO = 6  # outputs per anchor: x, y, w, h, obj, cls


def yolo_kernel(x_ref, anch_ref, o_ref, *, num_anchors, no, nx, stride):
    # x_ref, o_ref: (A*NO, S) f32, native layout, lane-dense (S = ny*nx).
    # anch_ref:     (2*A,)   f32 in SMEM: [w0, h0, w1, h1, ...].
    rows, s = x_ref.shape
    x = x_ref[...]                                              # (R, S)

    # Row index / per-anchor channel id (r mod NO) without integer division:
    # a short where-chain of subtractions (A is tiny and static).
    r = jax.lax.broadcasted_iota(jnp.int32, (rows, s), 0)
    ch = r
    for _ in range(num_anchors - 1):
        ch = jnp.where(ch >= no, ch - no, ch)
    is_x = ch == 0
    is_y = ch == 1
    is_xy = is_x | is_y
    is_wh = (ch == 2) | (ch == 3)

    # One EUP exp pass over the whole slab: exp(x) on w/h rows, exp(-x) elsewhere.
    e = jnp.exp(jnp.where(is_wh, x, -x))
    sig = 1.0 / (1.0 + e)                                       # sigmoid(x) on non-wh rows

    # In-kernel grid offsets from a lane iota: k -> (gy, gx) = (k // nx, k % nx).
    # f32 divide + floor is exact for these magnitudes (S << 2^24), no vector int div.
    k = jax.lax.broadcasted_iota(jnp.int32, (rows, s), 1).astype(jnp.float32)
    gy = jnp.floor(k / float(nx))
    gx = k - gy * float(nx)
    g = jnp.where(is_x, gx, jnp.where(is_y, gy, 0.0))

    # Per-row anchor scale (w on ch2, h on ch3) broadcast from SMEM scalars.
    scale = jnp.ones_like(x)
    for ai in range(num_anchors):
        scale = jnp.where(r == ai * no + 2, anch_ref[2 * ai], scale)
        scale = jnp.where(r == ai * no + 3, anch_ref[2 * ai + 1], scale)

    xy_val = (sig + g) * stride
    out = jnp.where(is_wh, e * scale, jnp.where(is_xy, xy_val, sig))
    o_ref[...] = out                                            # single dense store


def yolo_layer_pallas(x, anchors, img_size):
    """x: (1, A*6, ny, nx) float32 (NCHW, like the torch module input).
    anchors: (A, 2) float32 (w, h). img_size: Python int.
    Returns (A*ny*nx, 6) float32."""
    _, c, ny, nx = x.shape
    a = anchors.shape[0]
    assert c == a * NO
    # Matches torch: stride = img_size // x.shape[1] after squeeze (== ny).
    # NOTE: floor division (as in the module) silently assumes img_size % ny == 0.
    stride = img_size // ny
    s = ny * nx

    # Free row-major reshape into the native channel-major layout the kernel consumes.
    x_flat = x.reshape(a * NO, s)                               # (A*NO, S)
    anch_flat = anchors.reshape(-1).astype(jnp.float32)         # (2*A,) [w0,h0,w1,h1,...]

    kernel = functools.partial(
        yolo_kernel, num_anchors=a, no=NO, nx=nx, stride=float(stride))

    out = pl.pallas_call(
        kernel,
        out_shape=jax.ShapeDtypeStruct((a * NO, s), jnp.float32),
        in_specs=[
            pl.BlockSpec(memory_space=pltpu.MemorySpace.VMEM),   # whole (A*NO, S) slab
            pl.BlockSpec(memory_space=pltpu.MemorySpace.SMEM),   # anchors as scalars
        ],
        out_specs=pl.BlockSpec(memory_space=pltpu.MemorySpace.VMEM),
        input_output_aliases={0: 0},                             # reuse the input HBM slab
        cost_estimate=pl.CostEstimate(
            flops=14 * a * NO * s,
            transcendentals=a * NO * s,
            bytes_accessed=2 * a * NO * s * 4 + 2 * a * 4,
        ),
    )(x_flat, anch_flat)

    # XLA glue: (A*NO, S) -> (A, ny, nx, NO) -> (A*ny*nx, NO), matching torch view(-1, 6).
    return out.reshape(a, NO, ny, nx).transpose(0, 2, 3, 1).reshape(-1, NO)


def yolo_layer_ref(x, anchors, img_size):
    """Pure-JAX reference mirroring the PyTorch forward."""
    a = anchors.shape[0]
    xs = x[0]                                                    # (A*6, ny, nx)
    ny, nx = xs.shape[1], xs.shape[2]
    stride = img_size // ny
    xs = xs.reshape(a, NO, ny, nx).transpose(0, 2, 3, 1)         # (A, ny, nx, 6)
    yv, xv = jnp.meshgrid(jnp.arange(ny), jnp.arange(nx), indexing="ij")
    grid = jnp.stack([xv, yv], axis=-1).astype(jnp.float32)      # (ny, nx, 2)
    xy = (jax.nn.sigmoid(xs[..., 0:2]) + grid) * stride
    wh = jnp.exp(xs[..., 2:4]) * anchors[:, None, None, :]
    conf = jax.nn.sigmoid(xs[..., 4:])
    return jnp.concatenate([xy, wh, conf], axis=-1).reshape(-1, NO)


if __name__ == "__main__":
    key = jax.random.PRNGKey(0)

    # Deterministic "parameters": 3 anchors (w, h), as the module's __init__ builds.
    anchors = jnp.array([[4.0, 5.0], [6.0, 8.0], [10.0, 12.0]], dtype=jnp.float32)
    a = anchors.shape[0]

    ny = nx = 16
    img_size = 64                                                # stride = 4
    x = jax.random.normal(key, (1, a * NO, ny, nx), dtype=jnp.float32)

    out = yolo_layer_pallas(x, anchors, img_size)
    out = jax.block_until_ready(out)

    ref = yolo_layer_ref(x, anchors, img_size)
    assert out.shape == (a * ny * nx, NO), out.shape
    max_err = float(jnp.max(jnp.abs(out - ref) / (1.0 + jnp.abs(ref))))
    assert max_err < 1e-5, f"max rel err = {max_err}"

    print("KERNEL_OK")
</pallas_src>

<mosaic_0001>
module attributes {stable_mosaic.version = 11 : i64} {
  func.func @yolo_kernel(%arg0: memref<18x256xf32, #tpu.memory_space<vmem>>, %arg1: memref<6xf32, #tpu.memory_space<smem>>, %arg2: memref<18x256xf32, #tpu.memory_space<vmem>>) attributes {dimension_semantics = [], scalar_prefetch = 0 : i64, scratch_operands = 0 : i64, tpu.core_type = #tpu.core_type<tc>} {
    %c0 = arith.constant 0 : index
    %c0_0 = arith.constant 0 : index
    %0 = vector.load %arg0[%c0, %c0_0] : memref<18x256xf32, #tpu.memory_space<vmem>>, vector<18x256xf32>
    %1 = tpu.iota {dimensions = array<i32: 0>} : vector<18x256xi32>
    %c6_i32 = arith.constant 6 : i32
    %2 = vector.broadcast %c6_i32 : i32 to vector<18x256xi32>
    %3 = arith.cmpi sge, %1, %2 : vector<18x256xi32>
    %c6_i32_1 = arith.constant 6 : i32
    %4 = vector.broadcast %c6_i32_1 : i32 to vector<18x256xi32>
    %5 = arith.subi %1, %4 : vector<18x256xi32>
    %6 = arith.select %3, %5, %1 : vector<18x256xi1>, vector<18x256xi32>
    %c6_i32_2 = arith.constant 6 : i32
    %7 = vector.broadcast %c6_i32_2 : i32 to vector<18x256xi32>
    %8 = arith.cmpi sge, %6, %7 : vector<18x256xi32>
    %c6_i32_3 = arith.constant 6 : i32
    %9 = vector.broadcast %c6_i32_3 : i32 to vector<18x256xi32>
    %10 = arith.subi %6, %9 : vector<18x256xi32>
    %11 = arith.select %8, %10, %6 : vector<18x256xi1>, vector<18x256xi32>
    %c0_i32 = arith.constant 0 : i32
    %12 = vector.broadcast %c0_i32 : i32 to vector<18x256xi32>
    %13 = arith.cmpi eq, %11, %12 : vector<18x256xi32>
    %c1_i32 = arith.constant 1 : i32
    %14 = vector.broadcast %c1_i32 : i32 to vector<18x256xi32>
    %15 = arith.cmpi eq, %11, %14 : vector<18x256xi32>
    %16 = arith.ori %13, %15 : vector<18x256xi1>
    %c2_i32 = arith.constant 2 : i32
    %17 = vector.broadcast %c2_i32 : i32 to vector<18x256xi32>
    %18 = arith.cmpi eq, %11, %17 : vector<18x256xi32>
    %c3_i32 = arith.constant 3 : i32
    %19 = vector.broadcast %c3_i32 : i32 to vector<18x256xi32>
    %20 = arith.cmpi eq, %11, %19 : vector<18x256xi32>
    %21 = arith.ori %18, %20 : vector<18x256xi1>
    %cst = arith.constant 0.000000e+00 : f32
    %22 = vector.broadcast %cst : f32 to vector<18x256xf32>
    %23 = arith.subf %22, %0 : vector<18x256xf32>
    %24 = arith.select %21, %0, %23 : vector<18x256xi1>, vector<18x256xf32>
    %25 = math.exp %24 : vector<18x256xf32>
    %cst_4 = arith.constant 1.000000e+00 : f32
    %26 = vector.broadcast %cst_4 : f32 to vector<18x256xf32>
    %27 = arith.addf %26, %25 : vector<18x256xf32>
    %cst_5 = arith.constant 1.000000e+00 : f32
    %28 = vector.broadcast %cst_5 : f32 to vector<18x256xf32>
    %29 = arith.divf %28, %27 : vector<18x256xf32>
    %30 = tpu.iota {dimensions = array<i32: 1>} : vector<18x256xi32>
    %31 = arith.sitofp %30 : vector<18x256xi32> to vector<18x256xf32>
    %cst_6 = arith.constant 1.600000e+01 : f32
    %32 = vector.broadcast %cst_6 : f32 to vector<18x256xf32>
    %33 = arith.divf %31, %32 : vector<18x256xf32>
    %34 = math.floor %33 : vector<18x256xf32>
    %cst_7 = arith.constant 1.600000e+01 : f32
    %35 = vector.broadcast %cst_7 : f32 to vector<18x256xf32>
    %36 = arith.mulf %34, %35 : vector<18x256xf32>
    %37 = arith.subf %31, %36 : vector<18x256xf32>
    %cst_8 = arith.constant 0.000000e+00 : f32
    %38 = vector.broadcast %cst_8 : f32 to vector<18x256xf32>
    %39 = arith.select %15, %34, %38 : vector<18x256xi1>, vector<18x256xf32>
    %40 = arith.select %13, %37, %39 : vector<18x256xi1>, vector<18x256xf32>
    %cst_9 = arith.constant 1.000000e+00 : f32
    %41 = vector.broadcast %cst_9 : f32 to vector<18x256xf32>
    %c2_i32_10 = arith.constant 2 : i32
    %42 = vector.broadcast %c2_i32_10 : i32 to vector<18x256xi32>
    %43 = arith.cmpi eq, %1, %42 : vector<18x256xi32>
    %c0_11 = arith.constant 0 : index
    %44 = memref.load %arg1[%c0_11] : memref<6xf32, #tpu.memory_space<smem>>
    %45 = vector.broadcast %44 : f32 to vector<18x256xf32>
    %46 = arith.select %43, %45, %41 : vector<18x256xi1>, vector<18x256xf32>
    %c3_i32_12 = arith.constant 3 : i32
    %47 = vector.broadcast %c3_i32_12 : i32 to vector<18x256xi32>
    %48 = arith.cmpi eq, %1, %47 : vector<18x256xi32>
    %c1 = arith.constant 1 : index
    %49 = memref.load %arg1[%c1] : memref<6xf32, #tpu.memory_space<smem>>
    %50 = vector.broadcast %49 : f32 to vector<18x256xf32>
    %51 = arith.select %48, %50, %46 : vector<18x256xi1>, vector<18x256xf32>
    %c8_i32 = arith.constant 8 : i32
    %52 = vector.broadcast %c8_i32 : i32 to vector<18x256xi32>
    %53 = arith.cmpi eq, %1, %52 : vector<18x256xi32>
    %c2 = arith.constant 2 : index
    %54 = memref.load %arg1[%c2] : memref<6xf32, #tpu.memory_space<smem>>
    %55 = vector.broadcast %54 : f32 to vector<18x256xf32>
    %56 = arith.select %53, %55, %51 : vector<18x256xi1>, vector<18x256xf32>
    %c9_i32 = arith.constant 9 : i32
    %57 = vector.broadcast %c9_i32 : i32 to vector<18x256xi32>
    %58 = arith.cmpi eq, %1, %57 : vector<18x256xi32>
    %c3 = arith.constant 3 : index
    %59 = memref.load %arg1[%c3] : memref<6xf32, #tpu.memory_space<smem>>
    %60 = vector.broadcast %59 : f32 to vector<18x256xf32>
    %61 = arith.select %58, %60, %56 : vector<18x256xi1>, vector<18x256xf32>
    %c14_i32 = arith.constant 14 : i32
    %62 = vector.broadcast %c14_i32 : i32 to vector<18x256xi32>
    %63 = arith.cmpi eq, %1, %62 : vector<18x256xi32>
    %c4 = arith.constant 4 : index
    %64 = memref.load %arg1[%c4] : memref<6xf32, #tpu.memory_space<smem>>
    %65 = vector.broadcast %64 : f32 to vector<18x256xf32>
    %66 = arith.select %63, %65, %61 : vector<18x256xi1>, vector<18x256xf32>
    %c15_i32 = arith.constant 15 : i32
    %67 = vector.broadcast %c15_i32 : i32 to vector<18x256xi32>
    %68 = arith.cmpi eq, %1, %67 : vector<18x256xi32>
    %c5 = arith.constant 5 : index
    %69 = memref.load %arg1[%c5] : memref<6xf32, #tpu.memory_space<smem>>
    %70 = vector.broadcast %69 : f32 to vector<18x256xf32>
    %71 = arith.select %68, %70, %66 : vector<18x256xi1>, vector<18x256xf32>
    %72 = arith.addf %29, %40 : vector<18x256xf32>
    %cst_13 = arith.constant 4.000000e+00 : f32
    %73 = vector.broadcast %cst_13 : f32 to vector<18x256xf32>
    %74 = arith.mulf %72, %73 : vector<18x256xf32>
    %75 = arith.mulf %25, %71 : vector<18x256xf32>
    %76 = arith.select %16, %74, %29 : vector<18x256xi1>, vector<18x256xf32>
    %77 = arith.select %21, %75, %76 : vector<18x256xi1>, vector<18x256xf32>
    %c0_14 = arith.constant 0 : index
    %c0_15 = arith.constant 0 : index
    %78 = vector.load %arg2[%c0_14, %c0_15] : memref<18x256xf32, #tpu.memory_space<vmem>>, vector<18x256xf32>
    tpu.vector_store %arg2[%c0_14, %c0_15], %77 {strides = array<i32>} : memref<18x256xf32, #tpu.memory_space<vmem>>, vector<18x256xf32>,
    return
  }
}

</mosaic_0001>

<bundles_post_ra>
// kernel: tpu_custom_call.1
= control target key start
LH: loop header
LB: loop body
LE: loop exit
PB: predicated region body
PF: predicated region fallthrough
CT: control target
= control target key end

     0   :  { %7 = vsyncpa [#allocation3], 0  ;;  %s504_s0 = inlined_call_operand.hbm [shape: f32[18,256], index: 0, kind: input, shape index: {}, may-alias: {0,2}]   ;;  %s505_s1 = inlined_call_operand.vmem [shape: f32[6], index: 1, kind: input, shape index: {}]   ;;  %s506_s2 = inlined_call_operand.hbm [shape: f32[18,256], index: 2, kind: output, shape index: {}, may-alias: {0,2}]  }
   0x1   :  { %8 = vsyncpa [#allocation5], 0 }
   0x2   :  { %9 = vsyncpa [#allocation4], 0  ;;  %s353_s9 = smov [#allocation2]   ;;  %s28_s13 = sshll.u32 %s505_s1, 4  ;;  %s29_s13 = int_to_ptr.vmem [resolvable:$true] %s28_s13 }
   0x3   :  { %s15_s10 = sshll.u32 %s353_s9, 4  ;;  %s16_s10 = int_to_ptr.vmem [resolvable:$true] %s15_s10 }
   0x4   :  { %s303_s14 = scalar_lea.vmem %s16_s10, 768  ;;  %p308_p1 = scmp.lt.s32.totalorder %s16_s10, %s16_s10 }
   0x5   :  { %p304_p0 = scmp.ne.s32.totalorder %s16_s10, %s303_s14  ;;  %p309_p2 = scmp.lt.s32.totalorder %s303_s14, %s303_s14 }
   0x7   :  { %p310_p3 = por %p309_p2, %p308_p1 }
   0x9   :  { %p311_p4 = pnand %p310_p3, %p304_p0 }
   0xb   :  { %314 = shalt.err (!%p311_p4)
}
   0xc   :  { %s354_s15 = smov 256   ;;  %s355_s16 = smov 16  }
   0xd   :  { %21 = dma.hbm_to_vmem [thread:$0]  %s504_s0, 768, %s16_s10, [#allocation3], %s354_s15, %s354_s15, %s355_s16  }
   0xe   :  { %s315_s19 = scalar_lea.vmem %s29_s13, 16  ;;  %p320_p6 = scmp.lt.s32.totalorder %s29_s13, %s29_s13 }
   0xf   :  { %p316_p5 = scmp.ne.s32.totalorder %s29_s13, %s315_s19  ;;  %p321_p7 = scmp.lt.s32.totalorder %s315_s19, %s315_s19 }
  0x11   :  { %p322_p8 = por %p321_p7, %p320_p6 }
  0x13   :  { %p323_p9 = pnand %p322_p8, %p316_p5 }
  0x15   :  { %326 = shalt.err (!%p323_p9)
}
  0x16   :  { %s356_s1 = smov [#allocation6]  }
  0x17   :  { %31 = dma.vmem_to_smem %s29_s13, 16, %s356_s1, [#allocation5]  }
  0x18   :  { %347 = dma.done.wait [#allocation3], 768  }
  0x19   :  { %348 = vsyncadd [#allocation3], 4294966528 }
  0x1a   :  { %349 = dma.done.wait [#allocation5], 16  }
  0x1b   :  { %350 = vsyncadd [#allocation5], 4294967280 }
  0x1c   :  { %38 = sfence }
  0x1d   :  { %v45_v0 = vlaneseq  ;;  %v39_v2 = vld [vmem:[#allocation2] sm:$0xff]  ;;  %v40_v3 = vld [vmem:[#allocation2 + $0x8] sm:$0xff]  ;;  %v41_v13 = vld [vmem:[#allocation2 + $0x10] sm:$0xff]  ;;  %s156_s0 = sld [smem:[#allocation6]]  ;;  %s357_s25 = smov [#allocation7]  }
  0x1e   :  { %v85_v7 = vsub.f32 0.0, %v39_v2  ;;  %v86_v8 = vsub.f32 0.0, %v40_v3  ;;  %v42_v16 = vld [vmem:[#allocation2 + $0x18] sm:$0xff]  ;;  %v43_v19 = vld [vmem:[#allocation2 + $0x20] sm:$0x3]  ;;  %v87_v21 = vsub.f32 0.0, %v41_v13 }
  0x1f   :  { %v382_v1 = vshrl.u32 %v45_v0, 7  ;;  %v128_v18 = vand.u32 127, %v45_v0  ;;  %v88_v22 = vsub.f32 0.0, %v42_v16  ;;  %v89_v23 = vsub.f32 0.0, %v43_v19  ;;  %v44_v26 = vld [vmem:[#allocation2 + $0x28] sm:$0x3] }
  0x20   :  { %v90_v33 = vsub.f32 0.0, %v44_v26  ;;  %s415_s20 = sld [smem:[#allocation6 + $0x2]]  ;;  %s242_s26 = sshll.u32 %s357_s25, 4  ;;  %s243_s26 = int_to_ptr.vmem [resolvable:$true] %s242_s26 }
  0x21   :  { %vm49_vm0 = vcmp.ge.s32.totalorder %v382_v1, 6  ;;  %v255_v4 = vadd.s32 4294967290, %v382_v1  ;;  %v387_v5 = vadd.s32 8, %v382_v1  ;;  %v129_v24 = vadd.s32 128, %v128_v18  ;;  %s417_s21 = sld [smem:[#allocation6 + $0x1]]  ;;  %s327_s27 = scalar_lea.vmem %s243_s26, 768 }
  0x22   :  { %v130_v31 = vcvt.s32.f32 %v128_v18  ;;  %v105_v32 = vmul.f32 1.442695, %v89_v23  ;;  %v107_v35 = vmul.f32 1.442695, %v90_v33  ;;  %vm153_vm8 = vcmp.eq.s32.totalorder %v382_v1, 2  ;;  %s420_s22 = sld [smem:[#allocation6 + $0x3]]  ;;  %p328_p10 = scmp.ne.s32.totalorder %s243_s26, %s327_s27 }
  0x23   :  { %v390_v6 = vsel %vm49_vm0, %v255_v4, %v382_v1  ;;  %v256_v10 = vadd.s32 4294967290, %v387_v5  ;;  %v131_v34 = vcvt.s32.f32 %v129_v24  ;;  %v157_v45 = vstv %s156_s0  ;;  %s430_s23 = sld [smem:[#allocation6 + $0x4]]  ;;  %p332_p11 = scmp.lt.s32.totalorder %s243_s26, %s243_s26 }
  0x24   :  { %vm76_vm1 = vcmp.eq.s32.totalorder %v390_v6, 2  ;;  %vm79_vm2 = vcmp.eq.s32.totalorder %v390_v6, 3  ;;  %v133_v36 = vmul.f32 0.0625, %v130_v31  ;;  %vm70_vm9 = vcmp.eq.s32.totalorder %v390_v6, 1  ;;  %s440_s24 = sld [smem:[#allocation6 + $0x5]]  ;;  %p333_p12 = scmp.lt.s32.totalorder %s327_s27, %s327_s27 }
  0x25   :  { %vm394_vm3 = vmor %vm76_vm1, %vm79_vm2  ;;  %vm59_vm4 = vcmp.ge.s32.totalorder %v256_v10, 6  ;;  %v259_v17 = vadd.s32 4294967290, %v256_v10  ;;  %v134_v37 = vmul.f32 0.0625, %v131_v34  ;;  %vm67_vm10 = vcmp.eq.s32.totalorder %v390_v6, 0 }
  0x26   :  { %v91_v11 = vsel %vm394_vm3, %v39_v2, %v85_v7  ;;  %v92_v12 = vsel %vm394_vm3, %v40_v3, %v86_v8  ;;  %v135_v41 = vfloor.f32 %v133_v36  ;;  %v158_v49 = vsel %vm153_vm8, %v157_v45, 1.0  ;;  %vm457_vm0 = vmor %vm67_vm10, %vm70_vm9  ;;  %p334_p13 = por %p333_p12, %p332_p11 }
  0x27   :  { %v97_v14 = vmul.f32 1.442695, %v91_v11  ;;  %v99_v15 = vmul.f32 1.442695, %v92_v12  ;;  %v403_v20 = vsel %vm59_vm4, %v259_v17, %v256_v10  ;;  %v136_v43 = vfloor.f32 %v134_v37 }
  0x28   :  { %vm77_vm5 = vcmp.eq.s32.totalorder %v403_v20, 2  ;;  %vm80_vm6 = vcmp.eq.s32.totalorder %v403_v20, 3  ;;  %v137_v44 = vmul.f32 16.0, %v135_v41  ;;  %vm161_vm11 = vcmp.eq.s32.totalorder %v382_v1, 3  ;;  %p335_p0 = pnand %p334_p13, %p328_p10 }
  0x29   :  { %271 = vpow2.f32 %v97_v14  ;;  %vm407_vm7 = vmor %vm77_vm5, %vm80_vm6  ;;  %v138_v46 = vmul.f32 16.0, %v136_v43  ;;  %vm170_vm12 = vcmp.eq.s32.totalorder %v387_v5, 8  ;;  %v173_v53 = vstv %s415_s20 }
  0x2a   :  { %273 = vpow2.f32 %v99_v15  ;;  %v93_v27 = vsel %vm407_vm7, %v41_v13, %v87_v21  ;;  %v94_v28 = vsel %vm407_vm7, %v42_v16, %v88_v22  ;;  %v139_v52 = vsub.f32 %v130_v31, %v137_v44 }
  0x2b   :  { %v101_v29 = vmul.f32 1.442695, %v93_v27  ;;  %v103_v30 = vmul.f32 1.442695, %v94_v28  ;;  %v141_v56 = vsel %vm70_vm9, %v135_v41, 0.0  ;;  %v140_v57 = vsub.f32 %v131_v34, %v138_v46 }
  0x2c   :  { %v142_v59 = vsel %vm70_vm9, %v136_v43, 0.0  ;;  %v165_v60 = vstv %s417_s21  ;;  %v175_v62 = vsel %vm170_vm12, %v173_v53, 1.0  ;;  %v147_v63 = vsel %vm67_vm10, %v139_v52, %v141_v56 }
  0x2d   :  { %275 = vpow2.f32 %v101_v29  ;;  %vm178_vm13 = vcmp.eq.s32.totalorder %v387_v5, 9  ;;  %v181_v0 = vstv %s420_s22  ;;  %v166_v2 = vsel %vm161_vm11, %v165_v60, %v158_v49 }
  0x2e   :  { %277 = vpow2.f32 %v103_v30  ;;  %v148_v3 = vsel %vm67_vm10, %v140_v57, %v142_v59  ;;  %vm71_vm14 = vcmp.eq.s32.totalorder %v403_v20, 1  ;;  %v183_v10 = vsel %vm178_vm13, %v181_v0, %v175_v62 }
  0x2f   :  { %279 = vpow2.f32 %v105_v32  ;;  %vm186_vm15 = vcmp.eq.s32.totalorder %v387_v5, 14  ;;  %v189_v11 = vstv %s430_s23  ;;  %vm68_vm1 = vcmp.eq.s32.totalorder %v403_v20, 0 }
  0x30   :  { %281 = vpow2.f32 %v107_v35  ;;  %v143_v16 = vsel %vm71_vm14, %v135_v41, 0.0  ;;  %v144_v17 = vsel %vm71_vm14, %v136_v43, 0.0  ;;  %v191_v19 = vsel %vm186_vm15, %v189_v11, %v183_v10  ;;  %vm484_vm4 = vmor %vm68_vm1, %vm71_vm14 }
  0x31   :  { %vm194_vm2 = vcmp.eq.s32.totalorder %v387_v5, 15  ;;  %v197_v6 = vstv %s440_s24  ;;  %v149_v24 = vsel %vm68_vm1, %v139_v52, %v143_v16  ;;  %v150_v5 = vsel %vm68_vm1, %v140_v57, %v144_v17 }
  0x32   :  { %v199_v27 = vsel %vm194_vm2, %v197_v6, %v191_v19 }
  0x36   :  { %v272_v38 = vpop.eup %271 }
  0x37   :  { %v274_v39 = vpop.eup %273  ;;  %v109_v40 = vadd.f32 1.0, %v272_v38  ;;  %v213_v12 = vmul.f32 %v272_v38, %v166_v2 }
  0x38   :  { %v110_v42 = vadd.f32 1.0, %v274_v39  ;;  %v214_v15 = vmul.f32 %v274_v39, %v166_v2 }
  0x39   :  { %283 = vrcp.f32 %v109_v40 }
  0x3a   :  { %285 = vrcp.f32 %v110_v42  ;;  %v422_v47 = vpop.eup %275 }
  0x3b   :  { %v425_v48 = vpop.eup %277  ;;  %v111_v50 = vadd.f32 1.0, %v422_v47  ;;  %v215_v9 = vmul.f32 %v422_v47, %v199_v27 }
  0x3c   :  { %v280_v51 = vpop.eup %279  ;;  %v112_v54 = vadd.f32 1.0, %v425_v48  ;;  %v216_v36 = vmul.f32 %v425_v48, %v199_v27 }
  0x3d   :  { %v282_v55 = vpop.eup %281  ;;  %287 = vrcp.f32 %v111_v50  ;;  %v113_v58 = vadd.f32 1.0, %v280_v51 }
  0x3e   :  { %289 = vrcp.f32 %v112_v54  ;;  %v114_v61 = vadd.f32 1.0, %v282_v55 }
  0x3f   :  { %291 = vrcp.f32 %v113_v58 }
  0x40   :  { %293 = vrcp.f32 %v114_v61 }
  0x46   :  { %v284_v4 = vpop.eup %283 }
  0x47   :  { %v286_v7 = vpop.eup %285  ;;  %v201_v8 = vadd.f32 %v284_v4, %v147_v63 }
  0x48   :  { %v202_v13 = vadd.f32 %v286_v7, %v148_v3 }
  0x49   :  { %v207_v14 = vmul.f32 4.0, %v201_v8 }
  0x4a   :  { %v208_v18 = vmul.f32 4.0, %v202_v13  ;;  %v288_v28 = vpop.eup %287 }
  0x4b   :  { %v219_v21 = vsel %vm457_vm0, %v207_v14, %v284_v4  ;;  %v290_v29 = vpop.eup %289  ;;  %v203_v30 = vadd.f32 %v288_v28, %v149_v24 }
  0x4c   :  { %v225_v22 = vsel %vm394_vm3, %v213_v12, %v219_v21  ;;  %v220_v23 = vsel %vm457_vm0, %v208_v18, %v286_v7  ;;  %v292_v31 = vpop.eup %291  ;;  %v204_v33 = vadd.f32 %v290_v29, %v150_v5 }
  0x4d   :  { %231 = vst [vmem:[#allocation7] sm:$0xff] %v225_v22  ;;  %v226_v26 = vsel %vm394_vm3, %v214_v15, %v220_v23  ;;  %v294_v34 = vpop.eup %293  ;;  %v209_v35 = vmul.f32 4.0, %v203_v30  ;;  %235 = vst [vmem:[#allocation7 + $0x20] sm:$0x3] %v292_v31 }
  0x4e   :  { %232 = vst [vmem:[#allocation7 + $0x8] sm:$0xff] %v226_v26  ;;  %v210_v37 = vmul.f32 4.0, %v204_v33  ;;  %236 = vst [vmem:[#allocation7 + $0x28] sm:$0x3] %v294_v34 }
  0x4f   :  { %v221_v38 = vsel %vm484_vm4, %v209_v35, %v288_v28 }
  0x50   :  { %v227_v20 = vsel %vm407_vm7, %v215_v9, %v221_v38  ;;  %v222_v39 = vsel %vm484_vm4, %v210_v37, %v290_v29 }
  0x51   :  { %233 = vst [vmem:[#allocation7 + $0x10] sm:$0xff] %v227_v20  ;;  %v228_v40 = vsel %vm407_vm7, %v216_v36, %v222_v39 }
  0x52   :  { %234 = vst [vmem:[#allocation7 + $0x18] sm:$0xff] %v228_v40 }
  0x53   :  { %338 = shalt.err (!%p335_p0)
}
  0x54   :  { %248 = dma.vmem_to_hbm [thread:$0]  %s243_s26, 768, %s506_s2, [#allocation4], %s354_s15, %s354_s15, %s355_s16  }
  0x55   :  { %351 = dma.done.wait [#allocation4], 768  }
  0x56   :  { %352 = vsyncadd [#allocation4], 4294966528 }
  0x57   :  { %252 = vsyncpa [#allocation3], 1 }
  0x58   :  { %253 = vsyncpa [#allocation4], 1 }
  0x59   :  { %254 = vsyncpa [#allocation5], 1 }

</bundles_post_ra>
